<compile_context>
chip_gen: v6e
topology: v6e:2x2x1
jax: 0.10.0
libtpu: 0.0.40
codegen_flags: <defaults>
</compile_context>

<pallas_src>
import functools

import jax
import jax.numpy as jnp
import numpy as np
from jax import lax
from jax.experimental import pallas as pl
from jax.experimental.pallas import tpu as pltpu

_NEG = -1e30      # sentinel risk for invalid / padded entries: exp(_NEG) == 0
_LANES = 128


def _coxph_kernel(cnt_ref, risk_ref, evt_ref, out_ref, carry_ref, acc_ref):
    """One grid step: a (R, 128) column-major block of the sorted data.

    Block element (r, c) holds sorted index  block_offset + c * R + r : each
    lane (column) is R consecutive sorted entries, columns follow each other,
    and carry_ref carries the running sum of exp(risk) across blocks.
    """
    i = pl.program_id(0)

    @pl.when(i == 0)
    def _init():
        carry_ref[...] = jnp.zeros_like(carry_ref)   # running sum of exp(risk)
        acc_ref[...] = jnp.zeros_like(acc_ref)       # per-lane log-lik sum

    risk = risk_ref[...]                             # (R, 128), pre-shifted
    evt = evt_ref[...]                               # (R, 128), 0 if invalid
    r = risk.shape[0]

    e = jnp.exp(risk)                                # invalid / padded -> 0.0

    # Inclusive cumsum down each column (sublane axis): log2(R) Hillis-Steele
    # steps of sublane roll + masked add (XLU + VPU, exact f32, no MXU).
    row_idx = lax.broadcasted_iota(jnp.int32, (r, _LANES), 0)
    cs = e
    k = 1
    while k < r:
        shifted = pltpu.roll(cs, shift=k, axis=0)
        cs = cs + jnp.where(row_idx >= k, shifted, 0.0)
        k *= 2

    # Exclusive prefix of the per-column totals across lanes: 7 roll steps on
    # a single (1, 128) vreg.
    col_tot = cs[r - 1:r, :]                                   # (1, 128)
    lane_idx = lax.broadcasted_iota(jnp.int32, (1, _LANES), 1)
    col_incl = col_tot
    k = 1
    while k < _LANES:
        shifted = pltpu.roll(col_incl, shift=k, axis=1)
        col_incl = col_incl + jnp.where(lane_idx >= k, shifted, 0.0)
        k *= 2
    col_excl = col_incl - col_tot                              # exclusive

    # Global cumulative sum of exp(risk) at every element of this block.
    cs_global = cs + col_excl + carry_ref[...]                 # (R, 128)

    log_cs = jnp.log(jnp.maximum(cs_global, 1e-38))
    ll = (risk - log_cs) * evt                                 # 0 on invalid

    # Lane-dense accumulation: sublane reduce only; lanes reduced in finalize.
    acc_ref[...] += jnp.sum(ll, axis=0, keepdims=True)         # (1, 128)

    # Carry increment = total exp(risk) of this block (replicated over lanes,
    # independent of the lane-scan output -> short serialized dep chain).
    carry_ref[...] = carry_ref[...] + jnp.sum(col_tot, axis=1, keepdims=True)

    @pl.when(i == pl.num_programs(0) - 1)
    def _finalize():
        count = cnt_ref[0].astype(jnp.float32)
        total = jnp.sum(acc_ref[...], axis=1, keepdims=True)   # (1, 1)
        out_ref[...] = jnp.where(count > 0.0,
                                 -total / jnp.maximum(count, 1.0),
                                 jnp.zeros_like(total))


@functools.partial(jax.jit, static_argnames=("block_rows",))
def _coxph_loss_impl(risk, duration, event, block_rows):
    risk = jnp.asarray(risk, jnp.float32).reshape(-1)          # risk.squeeze()
    duration = jnp.asarray(duration, jnp.float32).reshape(-1)
    event = jnp.asarray(event, jnp.float32).reshape(-1)
    n = risk.shape[0]

    # ---- static layout: blocks of (block_rows x 128), column-major ----
    n_rows = max(1, -(-n // _LANES))
    if block_rows is None:
        block_rows = min(512, n_rows)                          # big DMA blocks
    block_rows = max(8, -(-int(block_rows) // 8) * 8)          # multiple of 8
    n_rows = -(-n_rows // block_rows) * block_rows
    num_blocks = n_rows // block_rows
    npad = n_rows * _LANES
    pad = npad - n

    # ---- XLA glue (jitted): mask, LSE shift, sort, gather, pad, layout ----
    valid = jnp.logical_and(duration != -1.0, event != -1.0)
    count = jnp.sum(valid, dtype=jnp.int32).reshape(1)

    m = jnp.max(jnp.where(valid, risk, -jnp.inf))              # max valid risk
    m = jnp.where(jnp.isfinite(m), m, 0.0)                     # all-invalid

    risk_eff = jnp.where(valid, risk - m, _NEG)                # shift cancels
    evt_eff = jnp.where(valid, event, 0.0)

    key = jnp.where(valid, duration, -jnp.inf)                 # invalid -> end
    idx = jnp.argsort(-key, stable=True)                       # descending
    data = jnp.take(jnp.stack([risk_eff, evt_eff]), idx, axis=1)   # (2, n)

    def to_blocks(x, fill):
        x = jnp.pad(x, (0, pad), constant_values=fill)
        # column-major within each block: sorted offset c*R + r -> (row r, lane c)
        x = x.reshape(num_blocks, _LANES, block_rows).transpose(0, 2, 1)
        return x.reshape(n_rows, _LANES)

    risk_s = to_blocks(data[0], _NEG)
    evt_s = to_blocks(data[1], 0.0)

    out = pl.pallas_call(
        _coxph_kernel,
        out_shape=jax.ShapeDtypeStruct((1, 1), jnp.float32),
        grid_spec=pltpu.PrefetchScalarGridSpec(
            num_scalar_prefetch=1,                             # valid count
            grid=(num_blocks,),
            in_specs=[
                pl.BlockSpec((block_rows, _LANES), lambda i, cnt: (i, 0)),
                pl.BlockSpec((block_rows, _LANES), lambda i, cnt: (i, 0)),
            ],
            out_specs=pl.BlockSpec((1, 1), lambda i, cnt: (0, 0)),
            scratch_shapes=[
                pltpu.VMEM((1, _LANES), jnp.float32),          # running carry
                pltpu.VMEM((1, _LANES), jnp.float32),          # ll accumulator
            ],
        ),
        compiler_params=pltpu.CompilerParams(
            dimension_semantics=("arbitrary",)),               # carried scan
    )(count, risk_s, evt_s)
    return out[0, 0]


def coxph_loss(risk, duration, event, *, block_rows=None):
    """Pallas TPU implementation of CoxPHLoss.forward(risk, duration, event)."""
    return _coxph_loss_impl(risk, duration, event, block_rows)


def _coxph_reference(risk, duration, event):
    """NumPy replica of the PyTorch forward for verification."""
    risk = np.asarray(risk, np.float32).reshape(-1)
    duration = np.asarray(duration, np.float32).reshape(-1)
    event = np.asarray(event, np.float32).reshape(-1)
    valid = (duration != -1) & (event != -1)
    if valid.sum() == 0:
        return np.float32(0.0)
    duration, event, risk = duration[valid], event[valid], risk[valid]
    idx = np.argsort(-duration, kind="stable")
    event, risk = event[idx], risk[idx]
    exp_risk_sum = np.cumsum(np.exp(risk.astype(np.float64)))
    ll = (risk - np.log(exp_risk_sum)) * event
    return np.float32(-np.mean(ll))


if __name__ == "__main__":
    key = jax.random.PRNGKey(0)
    k1, k2, k3, k4, k5 = jax.random.split(key, 5)

    # Small case, matching the module's typical (N, 1) risk input.
    n = 8
    risk = jax.random.normal(k1, (n, 1), dtype=jnp.float32)
    duration = jax.random.uniform(k2, (n,), dtype=jnp.float32,
                                  minval=0.1, maxval=5.0)
    event = jax.random.bernoulli(k3, 0.6, (n,)).astype(jnp.float32)
    duration = duration.at[2].set(-1.0)        # censoring sentinel
    event = event.at[5].set(-1.0)

    loss = jax.block_until_ready(coxph_loss(risk, duration, event))
    ref = _coxph_reference(np.asarray(risk), np.asarray(duration),
                           np.asarray(event))
    assert np.isfinite(float(loss))
    assert np.allclose(float(loss), float(ref), rtol=1e-4, atol=1e-5), \
        (float(loss), float(ref))

    # Multi-block case: exercises the inter-block running-prefix carry.
    n2 = 2048
    risk2 = jax.random.normal(k4, (n2, 1), dtype=jnp.float32)
    duration2 = (jax.random.permutation(k5, n2) + 1).astype(jnp.float32)
    event2 = jax.random.bernoulli(k1, 0.6, (n2,)).astype(jnp.float32)
    duration2 = duration2.at[7].set(-1.0)
    event2 = event2.at[100].set(-1.0)

    loss2 = jax.block_until_ready(
        coxph_loss(risk2, duration2, event2, block_rows=8))   # 2 grid blocks
    ref2 = _coxph_reference(np.asarray(risk2), np.asarray(duration2),
                            np.asarray(event2))
    assert np.isfinite(float(loss2))
    assert np.allclose(float(loss2), float(ref2), rtol=1e-4, atol=1e-5), \
        (float(loss2), float(ref2))

    print("KERNEL_OK")
</pallas_src>

<mosaic_0001>
module attributes {stable_mosaic.version = 11 : i64} {
  func.func @_coxph_kernel(%arg0: i32, %arg1: memref<1xi32, #tpu.memory_space<smem>>, %arg2: memref<8x128xf32, #tpu.memory_space<vmem>>, %arg3: memref<8x128xf32, #tpu.memory_space<vmem>>, %arg4: memref<1x1xf32, #tpu.memory_space<vmem>>, %arg5: memref<1x128xf32, #tpu.memory_space<vmem>>, %arg6: memref<1x128xf32, #tpu.memory_space<vmem>>) attributes {dimension_semantics = [#tpu.dimension_semantics<arbitrary>], iteration_bounds = array<i64: 1>, scalar_prefetch = 1 : i64, scratch_operands = 2 : i64, tpu.core_type = #tpu.core_type<tc>, window_params = [{transform_indices = @transform_0, window_bounds = array<i64: 8, 128>}, {transform_indices = @transform_1, window_bounds = array<i64: 8, 128>}, {pipeline_mode = #tpu.pipeline_mode<synchronous>, transform_indices = @transform_2, window_bounds = array<i64: 1, 1>}]} {
    %c0_i32 = arith.constant 0 : i32
    %0 = arith.cmpi eq, %arg0, %c0_i32 : i32
    %1 = arith.extui %0 : i1 to i32
    %c0_i32_0 = arith.constant 0 : i32
    %2 = arith.cmpi ne, %1, %c0_i32_0 : i32
    scf.if %2 {
      %cst_41 = arith.constant 0.000000e+00 : f32
      %94 = vector.broadcast %cst_41 : f32 to vector<1x128xf32>
      %c0_42 = arith.constant 0 : index
      %c0_43 = arith.constant 0 : index
      %95 = vector.load %arg5[%c0_42, %c0_43] : memref<1x128xf32, #tpu.memory_space<vmem>>, vector<1x128xf32>
      tpu.vector_store %arg5[%c0_42, %c0_43], %94 {strides = array<i32>} : memref<1x128xf32, #tpu.memory_space<vmem>>, vector<1x128xf32>,
      %cst_44 = arith.constant 0.000000e+00 : f32
      %96 = vector.broadcast %cst_44 : f32 to vector<1x128xf32>
      %c0_45 = arith.constant 0 : index
      %c0_46 = arith.constant 0 : index
      %97 = vector.load %arg6[%c0_45, %c0_46] : memref<1x128xf32, #tpu.memory_space<vmem>>, vector<1x128xf32>
      tpu.vector_store %arg6[%c0_45, %c0_46], %96 {strides = array<i32>} : memref<1x128xf32, #tpu.memory_space<vmem>>, vector<1x128xf32>,
    } else {
    }
    %c0 = arith.constant 0 : index
    %c0_1 = arith.constant 0 : index
    %3 = vector.load %arg2[%c0, %c0_1] : memref<8x128xf32, #tpu.memory_space<vmem>>, vector<8x128xf32>
    %c0_2 = arith.constant 0 : index
    %c0_3 = arith.constant 0 : index
    %4 = vector.load %arg3[%c0_2, %c0_3] : memref<8x128xf32, #tpu.memory_space<vmem>>, vector<8x128xf32>
    %5 = math.exp %3 : vector<8x128xf32>
    %6 = tpu.iota {dimensions = array<i32: 0>} : vector<8x128xi32>
    %c1_i32 = arith.constant 1 : i32
    %7 = tpu.dynamic_rotate %5 by %c1_i32 dim 0 : vector<8x128xf32>, i32 -> vector<8x128xf32>
    %c1_i32_4 = arith.constant 1 : i32
    %8 = vector.broadcast %c1_i32_4 : i32 to vector<8x128xi32>
    %9 = arith.cmpi sge, %6, %8 : vector<8x128xi32>
    %cst = arith.constant 0.000000e+00 : f32
    %10 = vector.broadcast %cst : f32 to vector<8x128xf32>
    %11 = arith.select %9, %7, %10 : vector<8x128xi1>, vector<8x128xf32>
    %12 = arith.addf %5, %11 : vector<8x128xf32>
    %c2_i32 = arith.constant 2 : i32
    %13 = tpu.dynamic_rotate %12 by %c2_i32 dim 0 : vector<8x128xf32>, i32 -> vector<8x128xf32>
    %c2_i32_5 = arith.constant 2 : i32
    %14 = vector.broadcast %c2_i32_5 : i32 to vector<8x128xi32>
    %15 = arith.cmpi sge, %6, %14 : vector<8x128xi32>
    %cst_6 = arith.constant 0.000000e+00 : f32
    %16 = vector.broadcast %cst_6 : f32 to vector<8x128xf32>
    %17 = arith.select %15, %13, %16 : vector<8x128xi1>, vector<8x128xf32>
    %18 = arith.addf %12, %17 : vector<8x128xf32>
    %c4_i32 = arith.constant 4 : i32
    %19 = tpu.dynamic_rotate %18 by %c4_i32 dim 0 : vector<8x128xf32>, i32 -> vector<8x128xf32>
    %c4_i32_7 = arith.constant 4 : i32
    %20 = vector.broadcast %c4_i32_7 : i32 to vector<8x128xi32>
    %21 = arith.cmpi sge, %6, %20 : vector<8x128xi32>
    %cst_8 = arith.constant 0.000000e+00 : f32
    %22 = vector.broadcast %cst_8 : f32 to vector<8x128xf32>
    %23 = arith.select %21, %19, %22 : vector<8x128xi1>, vector<8x128xf32>
    %24 = arith.addf %18, %23 : vector<8x128xf32>
    %25 = vector.extract_strided_slice %24 {offsets = [7, 0], sizes = [1, 128], strides = [1, 1]} : vector<8x128xf32> to vector<1x128xf32>
    %26 = tpu.iota {dimensions = array<i32: 1>} : vector<1x128xi32>
    %c1_i32_9 = arith.constant 1 : i32
    %27 = tpu.dynamic_rotate %25 by %c1_i32_9 dim 1 : vector<1x128xf32>, i32 -> vector<1x128xf32>
    %c1_i32_10 = arith.constant 1 : i32
    %28 = vector.broadcast %c1_i32_10 : i32 to vector<1x128xi32>
    %29 = arith.cmpi sge, %26, %28 : vector<1x128xi32>
    %cst_11 = arith.constant 0.000000e+00 : f32
    %30 = vector.broadcast %cst_11 : f32 to vector<1x128xf32>
    %31 = arith.select %29, %27, %30 : vector<1x128xi1>, vector<1x128xf32>
    %32 = arith.addf %25, %31 : vector<1x128xf32>
    %c2_i32_12 = arith.constant 2 : i32
    %33 = tpu.dynamic_rotate %32 by %c2_i32_12 dim 1 : vector<1x128xf32>, i32 -> vector<1x128xf32>
    %c2_i32_13 = arith.constant 2 : i32
    %34 = vector.broadcast %c2_i32_13 : i32 to vector<1x128xi32>
    %35 = arith.cmpi sge, %26, %34 : vector<1x128xi32>
    %cst_14 = arith.constant 0.000000e+00 : f32
    %36 = vector.broadcast %cst_14 : f32 to vector<1x128xf32>
    %37 = arith.select %35, %33, %36 : vector<1x128xi1>, vector<1x128xf32>
    %38 = arith.addf %32, %37 : vector<1x128xf32>
    %c4_i32_15 = arith.constant 4 : i32
    %39 = tpu.dynamic_rotate %38 by %c4_i32_15 dim 1 : vector<1x128xf32>, i32 -> vector<1x128xf32>
    %c4_i32_16 = arith.constant 4 : i32
    %40 = vector.broadcast %c4_i32_16 : i32 to vector<1x128xi32>
    %41 = arith.cmpi sge, %26, %40 : vector<1x128xi32>
    %cst_17 = arith.constant 0.000000e+00 : f32
    %42 = vector.broadcast %cst_17 : f32 to vector<1x128xf32>
    %43 = arith.select %41, %39, %42 : vector<1x128xi1>, vector<1x128xf32>
    %44 = arith.addf %38, %43 : vector<1x128xf32>
    %c8_i32 = arith.constant 8 : i32
    %45 = tpu.dynamic_rotate %44 by %c8_i32 dim 1 : vector<1x128xf32>, i32 -> vector<1x128xf32>
    %c8_i32_18 = arith.constant 8 : i32
    %46 = vector.broadcast %c8_i32_18 : i32 to vector<1x128xi32>
    %47 = arith.cmpi sge, %26, %46 : vector<1x128xi32>
    %cst_19 = arith.constant 0.000000e+00 : f32
    %48 = vector.broadcast %cst_19 : f32 to vector<1x128xf32>
    %49 = arith.select %47, %45, %48 : vector<1x128xi1>, vector<1x128xf32>
    %50 = arith.addf %44, %49 : vector<1x128xf32>
    %c16_i32 = arith.constant 16 : i32
    %51 = tpu.dynamic_rotate %50 by %c16_i32 dim 1 : vector<1x128xf32>, i32 -> vector<1x128xf32>
    %c16_i32_20 = arith.constant 16 : i32
    %52 = vector.broadcast %c16_i32_20 : i32 to vector<1x128xi32>
    %53 = arith.cmpi sge, %26, %52 : vector<1x128xi32>
    %cst_21 = arith.constant 0.000000e+00 : f32
    %54 = vector.broadcast %cst_21 : f32 to vector<1x128xf32>
    %55 = arith.select %53, %51, %54 : vector<1x128xi1>, vector<1x128xf32>
    %56 = arith.addf %50, %55 : vector<1x128xf32>
    %c32_i32 = arith.constant 32 : i32
    %57 = tpu.dynamic_rotate %56 by %c32_i32 dim 1 : vector<1x128xf32>, i32 -> vector<1x128xf32>
    %c32_i32_22 = arith.constant 32 : i32
    %58 = vector.broadcast %c32_i32_22 : i32 to vector<1x128xi32>
    %59 = arith.cmpi sge, %26, %58 : vector<1x128xi32>
    %cst_23 = arith.constant 0.000000e+00 : f32
    %60 = vector.broadcast %cst_23 : f32 to vector<1x128xf32>
    %61 = arith.select %59, %57, %60 : vector<1x128xi1>, vector<1x128xf32>
    %62 = arith.addf %56, %61 : vector<1x128xf32>
    %c64_i32 = arith.constant 64 : i32
    %63 = tpu.dynamic_rotate %62 by %c64_i32 dim 1 : vector<1x128xf32>, i32 -> vector<1x128xf32>
    %c64_i32_24 = arith.constant 64 : i32
    %64 = vector.broadcast %c64_i32_24 : i32 to vector<1x128xi32>
    %65 = arith.cmpi sge, %26, %64 : vector<1x128xi32>
    %cst_25 = arith.constant 0.000000e+00 : f32
    %66 = vector.broadcast %cst_25 : f32 to vector<1x128xf32>
    %67 = arith.select %65, %63, %66 : vector<1x128xi1>, vector<1x128xf32>
    %68 = arith.addf %62, %67 : vector<1x128xf32>
    %69 = arith.subf %68, %25 : vector<1x128xf32>
    %70 = vector.broadcast %69 : vector<1x128xf32> to vector<8x128xf32>
    %71 = arith.addf %24, %70 : vector<8x128xf32>
    %c0_26 = arith.constant 0 : index
    %c0_27 = arith.constant 0 : index
    %72 = vector.load %arg5[%c0_26, %c0_27] : memref<1x128xf32, #tpu.memory_space<vmem>>, vector<1x128xf32>
    %73 = vector.broadcast %72 : vector<1x128xf32> to vector<8x128xf32>
    %74 = arith.addf %71, %73 : vector<8x128xf32>
    %cst_28 = arith.constant 9.99999935E-39 : f32
    %75 = vector.broadcast %cst_28 : f32 to vector<8x128xf32>
    %76 = arith.maximumf %74, %75 : vector<8x128xf32>
    %77 = math.log %76 : vector<8x128xf32>
    %78 = arith.subf %3, %77 : vector<8x128xf32>
    %79 = arith.mulf %78, %4 : vector<8x128xf32>
    %c0_29 = arith.constant 0 : index
    %c0_30 = arith.constant 0 : index
    %80 = vector.load %arg6[%c0_29, %c0_30] : memref<1x128xf32, #tpu.memory_space<vmem>>, vector<1x128xf32>
    %cst_31 = arith.constant dense<0.000000e+00> : vector<128xf32>
    %81 = vector.multi_reduction <add>, %79, %cst_31 [0] : vector<8x128xf32> to vector<128xf32>
    %82 = vector.shape_cast %81 : vector<128xf32> to vector<1x128xf32>
    %83 = arith.addf %80, %82 : vector<1x128xf32>
    %c0_32 = arith.constant 0 : index
    %c0_33 = arith.constant 0 : index
    %84 = vector.load %arg6[%c0_32, %c0_33] : memref<1x128xf32, #tpu.memory_space<vmem>>, vector<1x128xf32>
    tpu.vector_store %arg6[%c0_32, %c0_33], %83 {strides = array<i32>} : memref<1x128xf32, #tpu.memory_space<vmem>>, vector<1x128xf32>,
    %c0_34 = arith.constant 0 : index
    %c0_35 = arith.constant 0 : index
    %85 = vector.load %arg5[%c0_34, %c0_35] : memref<1x128xf32, #tpu.memory_space<vmem>>, vector<1x128xf32>
    %cst_36 = arith.constant dense<0.000000e+00> : vector<1xf32>
    %86 = vector.multi_reduction <add>, %25, %cst_36 [1] : vector<1x128xf32> to vector<1xf32>
    %87 = vector.shape_cast %86 : vector<1xf32> to vector<1x1xf32>
    %88 = vector.broadcast %87 : vector<1x1xf32> to vector<1x128xf32>
    %89 = arith.addf %85, %88 : vector<1x128xf32>
    %c0_37 = arith.constant 0 : index
    %c0_38 = arith.constant 0 : index
    %90 = vector.load %arg5[%c0_37, %c0_38] : memref<1x128xf32, #tpu.memory_space<vmem>>, vector<1x128xf32>
    tpu.vector_store %arg5[%c0_37, %c0_38], %89 {strides = array<i32>} : memref<1x128xf32, #tpu.memory_space<vmem>>, vector<1x128xf32>,
    %c0_i32_39 = arith.constant 0 : i32
    %91 = arith.cmpi eq, %arg0, %c0_i32_39 : i32
    %92 = arith.extui %91 : i1 to i32
    %c0_i32_40 = arith.constant 0 : i32
    %93 = arith.cmpi ne, %92, %c0_i32_40 : i32
    scf.if %93 {
      %c0_41 = arith.constant 0 : index
      %94 = memref.load %arg1[%c0_41] : memref<1xi32, #tpu.memory_space<smem>>
      %95 = arith.sitofp %94 : i32 to f32
      %c0_42 = arith.constant 0 : index
      %c0_43 = arith.constant 0 : index
      %96 = vector.load %arg6[%c0_42, %c0_43] : memref<1x128xf32, #tpu.memory_space<vmem>>, vector<1x128xf32>
      %cst_44 = arith.constant dense<0.000000e+00> : vector<1xf32>
      %97 = vector.multi_reduction <add>, %96, %cst_44 [1] : vector<1x128xf32> to vector<1xf32>
      %98 = vector.shape_cast %97 : vector<1xf32> to vector<1x1xf32>
      %cst_45 = arith.constant 0.000000e+00 : f32
      %99 = arith.cmpf ogt, %95, %cst_45 : f32
      %cst_46 = arith.constant 0.000000e+00 : f32
      %100 = vector.broadcast %cst_46 : f32 to vector<1x1xf32>
      %101 = arith.subf %100, %98 : vector<1x1xf32>
      %cst_47 = arith.constant 1.000000e+00 : f32
      %102 = arith.maximumf %95, %cst_47 : f32
      %103 = vector.broadcast %102 : f32 to vector<1x1xf32>
      %104 = arith.divf %101, %103 : vector<1x1xf32>
      %cst_48 = arith.constant 0.000000e+00 : f32
      %105 = vector.broadcast %cst_48 : f32 to vector<1x1xf32>
      %106 = arith.select %99, %104, %105 : vector<1x1xf32>
      %c0_49 = arith.constant 0 : index
      %c0_50 = arith.constant 0 : index
      %107 = vector.load %arg4[%c0_49, %c0_50] : memref<1x1xf32, #tpu.memory_space<vmem>>, vector<1x1xf32>
      tpu.vector_store %arg4[%c0_49, %c0_50], %106 {strides = array<i32>} : memref<1x1xf32, #tpu.memory_space<vmem>>, vector<1x1xf32>,
    } else {
    }
    return
  }
  func.func @transform_0(%arg0: i32, %arg1: memref<1xi32, #tpu.memory_space<smem>>) -> (i32, i32) {
    %c0_i32 = arith.constant 0 : i32
    %c0_i32_0 = arith.constant 0 : i32
    return %arg0, %c0_i32 : i32, i32
  }
  func.func @transform_1(%arg0: i32, %arg1: memref<1xi32, #tpu.memory_space<smem>>) -> (i32, i32) {
    %c0_i32 = arith.constant 0 : i32
    %c0_i32_0 = arith.constant 0 : i32
    return %arg0, %c0_i32 : i32, i32
  }
  func.func @transform_2(%arg0: i32, %arg1: memref<1xi32, #tpu.memory_space<smem>>) -> (i32, i32) {
    %c0_i32 = arith.constant 0 : i32
    %c0_i32_0 = arith.constant 0 : i32
    %c0_i32_1 = arith.constant 0 : i32
    return %c0_i32, %c0_i32_0 : i32, i32
  }
}

</mosaic_0001>

<bundles_post_ra>
// kernel: _coxph_loss_impl.1
= control target key start
LH: loop header
LB: loop body
LE: loop exit
PB: predicated region body
PF: predicated region fallthrough
CT: control target
= control target key end

     0   :  { %s295_s0 = inlined_call_operand.<no memory space> [shape: s32[1], index: 0, kind: input, shape index: {}]   ;;  %s296_s1 = inlined_call_operand.vmem [shape: f32[8,128], index: 1, kind: input, shape index: {}]   ;;  %s297_s2 = inlined_call_operand.vmem [shape: f32[8,128], index: 2, kind: input, shape index: {}]   ;;  %s298_s3 = inlined_call_operand.hbm [shape: f32[1,1], index: 3, kind: output, shape index: {}]  }
   0x1   :  { %v266_v0 = vld [vmem:[%s296_s1] sm:$0xff] }
   0x2   :  { %9 = vsyncpa [#allocation7], 0  ;;  %v22_v1 = vmul.f32 1.442695, %v266_v0  ;;  %v24_v2 = vlaneseq  ;;  %s233_s1 = smov 1   ;;  %s234_s14 = smov 2  }
   0x3   :  { %s235_s15 = smov 4   ;;  %s236_s16 = smov 8   ;;  %v239_v41 = vmov 0.0   ;;  %vm146_vm9 = vcmask 1047559   ;;  %v21_v61 = vld [vmem:[%s297_s2] sm:$0xff]  ;;  %vm164_vm11 = vcmask 1040384  }
   0x4   :  { %205 = vpow2.f32 %v22_v1  ;;  %v269_v3 = vshrl.u32 %v24_v2, 7  ;;  %v39_v15 = vand.u32 127, %v24_v2  ;;  %s237_s17 = smov 16   ;;  %s238_s18 = smov 32   ;;  %18 = vst [vmem:[#allocation2] sm:$0x1] %v239_v41 }
   0x5   :  { %19 = vst [vmem:[#allocation3] sm:$0x1] %v239_v41  ;;  %s240_s19 = smov 64   ;;  %s162_s23 = scvt.s32.f32 %s295_s0  ;;  %vm178_vm13 = vcmask 0  }
   0x6   :  { %vm27_vm0 = vcmp.ge.s32.totalorder %v269_v3, 1  ;;  %vm31_vm1 = vcmp.ge.s32.totalorder %v269_v3, 2  ;;  %vm35_vm2 = vcmp.ge.s32.totalorder %v269_v3, 4  ;;  %vm45_vm3 = vcmp.ge.s32.totalorder %v39_v15, 1  ;;  %s241_s24 = smov 1.0   ;;  %p168_p0 = scmp.gt.s32.totalorder %s295_s0, 0 }
   0x7   :  { %vm56_vm4 = vcmp.ge.s32.totalorder %v39_v15, 2  ;;  %vm67_vm5 = vcmp.ge.s32.totalorder %v39_v15, 4  ;;  %vm78_vm6 = vcmp.ge.s32.totalorder %v39_v15, 8  ;;  %vm89_vm7 = vcmp.ge.s32.totalorder %v39_v15, 16  ;;  %s170_s25 = smax.f32 %s241_s24, %s162_s23  ;;  %s242_s29 = smov [#allocation6]  }
   0x8   :  { %vm100_vm8 = vcmp.ge.s32.totalorder %v39_v15, 32  ;;  %vm111_vm10 = vcmp.ge.s32.totalorder %v39_v15, 64  ;;  %v120_v51 = vsub.s32 7, %v269_v3  ;;  %s174_s28 = scalar_select %p168_p0, 1, 0 }
   0x9   :  { %s186_s30 = sshll.u32 %s242_s29, 4  ;;  %s187_s30 = int_to_ptr.vmem [resolvable:$true] %s186_s30 }
   0xa   :  { %v175_v15 = vstv %s174_s28  ;;  %s211_s4 = scalar_lea.vmem %s187_s30, 16  ;;  %s215_s5 = scalar_lea.vmem %s187_s30, 32 }
   0xb   :  { %v194_v55 = vld [vmem:[#allocation2] ss:$0 sm:$0xff]  ;;  %vm176_vm12 = vcmp.eq.s32.totalorder %v175_v15, 1  ;;  %p212_p1 = scmp.ne.s32.totalorder %s187_s30, %s211_s4  ;;  %p216_p2 = scmp.lt.s32.totalorder %s187_s30, %s187_s30 }
   0xc   :  { %p217_p3 = scmp.lt.s32.totalorder %s215_s5, %s211_s4 }
   0xe   :  { %p218_p4 = por %p217_p3, %p216_p2 }
  0x10   :  { %p219_p5 = pnand %p218_p4, %p212_p1 }
  0x11   :  { %v206_v4 = vpop.eup %205 }
  0x12   :  { %v26_v5 = vrot.slane %v206_v4, 7 }
  0x14   :  { %v28_v6 = vsel %vm27_vm0, %v26_v5, 0.0 }
  0x15   :  { %v29_v7 = vadd.f32 %v206_v4, %v28_v6  ;;  %v136_v6 = vld [vmem:[#allocation3] sm:$0x1] }
  0x17   :  { %v30_v8 = vrot.slane %v29_v7, 6 }
  0x19   :  { %v32_v9 = vsel %vm31_vm1, %v30_v8, 0.0 }
  0x1a   :  { %v33_v10 = vadd.f32 %v32_v9, %v29_v7 }
  0x1c   :  { %v34_v11 = vrot.slane %v33_v10, 4 }
  0x1e   :  { %v36_v12 = vsel %vm35_vm2, %v34_v11, 0.0 }
  0x1f   :  { %v274_v13 = vadd.f32 %v36_v12, %v33_v10  ;;  %v145_v12 = vld [vmem:[#allocation2] sm:$0x1] }
  0x21   :  { %v41_v14 = vrot.slane %v274_v13, 7  ;;  %v147_v47 = vsel %vm146_vm9, %v274_v13, 0.0 }
  0x23   :  { %43 = vrot.lane.b32.xlu0 %v41_v14, %s233_s1 }
  0x95   :  { %v44_v16 = vpop.permute.xlu0 %43 }
  0x96   :  { %v46_v17 = vsel %vm45_vm3, %v44_v16, 0.0 }
  0x97   :  { %v48_v18 = vrot.slane %v46_v17, 1 }
  0x99   :  { %v50_v19 = vadd.f32 %v48_v18, %v274_v13 }
  0x9b   :  { %v52_v20 = vrot.slane %v50_v19, 7 }
  0x9d   :  { %54 = vrot.lane.b32.xlu0 %v52_v20, %s234_s14 }
 0x10f   :  { %v55_v21 = vpop.permute.xlu0 %54 }
 0x110   :  { %v57_v22 = vsel %vm56_vm4, %v55_v21, 0.0 }
 0x111   :  { %v59_v23 = vrot.slane %v57_v22, 1 }
 0x113   :  { %v61_v24 = vadd.f32 %v59_v23, %v50_v19 }
 0x115   :  { %v63_v25 = vrot.slane %v61_v24, 7 }
 0x117   :  { %65 = vrot.lane.b32.xlu1 %v63_v25, %s235_s15 }
 0x189   :  { %v66_v26 = vpop.permute.xlu1 %65 }
 0x18a   :  { %v68_v27 = vsel %vm67_vm5, %v66_v26, 0.0 }
 0x18b   :  { %v70_v28 = vrot.slane %v68_v27, 1 }
 0x18d   :  { %v72_v29 = vadd.f32 %v70_v28, %v61_v24 }
 0x18f   :  { %v74_v30 = vrot.slane %v72_v29, 7 }
 0x191   :  { %76 = vrot.lane.b32.xlu1 %v74_v30, %s236_s16 }
 0x203   :  { %v77_v31 = vpop.permute.xlu1 %76 }
 0x204   :  { %v79_v32 = vsel %vm78_vm6, %v77_v31, 0.0 }
 0x205   :  { %v81_v33 = vrot.slane %v79_v32, 1 }
 0x207   :  { %v83_v34 = vadd.f32 %v81_v33, %v72_v29 }
 0x209   :  { %v85_v35 = vrot.slane %v83_v34, 7 }
 0x20b   :  { %87 = vrot.lane.b32.xlu0 %v85_v35, %s237_s17 }
 0x27d   :  { %v88_v36 = vpop.permute.xlu0 %87 }
 0x27e   :  { %v90_v37 = vsel %vm89_vm7, %v88_v36, 0.0 }
 0x27f   :  { %v92_v38 = vrot.slane %v90_v37, 1 }
 0x281   :  { %v94_v39 = vadd.f32 %v92_v38, %v83_v34 }
 0x283   :  { %v96_v40 = vrot.slane %v94_v39, 7 }
 0x285   :  { %98 = vrot.lane.b32.xlu1 %v96_v40, %s238_s18 }
 0x2f7   :  { %v99_v42 = vpop.permute.xlu1 %98 }
 0x2f8   :  { %v101_v43 = vsel %vm100_vm8, %v99_v42, 0.0 }
 0x2f9   :  { %v103_v44 = vrot.slane %v101_v43, 1 }
 0x2fb   :  { %v105_v45 = vadd.f32 %v103_v44, %v94_v39 }
 0x2fd   :  { %v107_v46 = vrot.slane %v105_v45, 7 }
 0x2ff   :  { %109 = vrot.lane.b32.xlu0 %v107_v46, %s240_s19 }
 0x31e   :  { %148 = vadd.xlane.f32.xlu0 %v147_v47 }
 0x371   :  { %v110_v48 = vpop.permute.xlu0 %109 }
 0x372   :  { %v112_v49 = vsel %vm111_vm10, %v110_v48, 0.0 }
 0x373   :  { %v114_v50 = vrot.slane %v112_v49, 1 }
 0x375   :  { %v116_v52 = vadd.f32 %v114_v50, %v105_v45 }
 0x377   :  { %v117_v53 = vsub.f32 %v116_v52, %v274_v13 }
 0x379   :  { %v121_v54 = vrot.slane %v117_v53, %v120_v51 }
 0x37b   :  { %v122_v56 = vadd.f32 %v121_v54, %v274_v13 }
 0x37d   :  { %v130_v57 = vadd.f32 %v194_v55, %v122_v56 }
 0x37f   :  { %v131_v58 = vmax.f32 %v130_v57, 1e-38 }
 0x381   :  { %207 = vlog2.f32 %v131_v58 }
 0x38e   :  { %v208_v59 = vpop.eup %207 }
 0x38f   :  { %v133_v60 = vmul.f32 0.6931472, %v208_v59 }
 0x391   :  { %v134_v62 = vsub.f32 %v266_v0, %v133_v60  ;;  %v171_v0 = vstv %s170_s25 }
 0x392   :  { %209 = vrcp.f32 %v171_v0 }
 0x393   :  { %v135_v63 = vmul.f32 %v134_v62, %v21_v61 }
 0x395   :  { %v137_v1 = vrot.slane %v135_v63, 4 }
 0x397   :  { %v138_v2 = vadd.f32 %v137_v1, %v135_v63 }
 0x399   :  { %v139_v3 = vrot.slane %v138_v2, 2 }
 0x39b   :  { %v140_v4 = vadd.f32 %v139_v3, %v138_v2 }
 0x39d   :  { %v141_v5 = vrot.slane %v140_v4, 1 }
 0x39f   :  { %v142_v7 = vadd.f32 %v141_v5, %v140_v4  ;;  %v210_v16 = vpop.eup %209 }
 0x3a1   :  { %v143_v8 = vadd.f32 %v142_v7, %v136_v6 }
 0x3a3   :  { %144 = vst [vmem:[#allocation3] sm:$0x1] %v143_v8 }
 0x3a7   :  { %v149_v11 = vpop.xlane.xlu0 %148 }
 0x3a8   :  { %v154_v13 = vrot.slane %v149_v11, %v120_v51 }
 0x3aa   :  { %v163_v9 = vld [vmem:[#allocation3] sm:$0x1]  ;;  %v156_v14 = vadd.f32 %v154_v13, %v145_v12 }
 0x3ab   :  { %v165_v10 = vsel %vm164_vm11, %v163_v9, 0.0 }
 0x3ac   :  { %166 = vadd.xlane.f32.xlu1 %v165_v10  ;;  %157 = vst [vmem:[#allocation2] sm:$0x1] %v156_v14 }
 0x435   :  { %v167_v17 = vpop.xlane.xlu1 %166 }
 0x436   :  { %v169_v18 = vsub.f32 0.0, %v167_v17 }
 0x438   :  { %v173_v19 = vmul.f32 %v210_v16, %v169_v18 }
 0x43a   :  { %v177_v20 = vsel %vm176_vm12, %v173_v19, 0.0 }
 0x43b   :  { %179 = vst.msk [vmem:[#allocation6] sm:$0x1] %vm178_vm13, %v177_v20 }
 0x43c   :  { %222 = shalt.err (!%p219_p5)
}
 0x43d   :  { %189 = dma.vmem_to_hbm [thread:$0]  %s187_s30, 16, %s298_s3, [#allocation7]  }
 0x43e   :  { %231 = dma.done.wait [#allocation7], 16  }
 0x43f   :  { %232 = vsyncadd [#allocation7], 4294967280 }
 0x440   :  { %193 = vsyncpa [#allocation7], 1 }

</bundles_post_ra>
